<compile_context>
chip_gen: v7x
topology: tpu7x:2x2x1
jax: 0.10.0
libtpu: 0.0.40
codegen_flags: <defaults>
</compile_context>

<pallas_src>
import math

import jax
import jax.numpy as jnp
from jax.experimental import pallas as pl
from jax.experimental.pallas import tpu as pltpu

_MIB = 1024 * 1024


def _copy_kernel(x_ref, o_ref):
    # One full-width, lane-dense block copy per grid step.
    o_ref[...] = x_ref[...]


def _vmem_budget_bytes():
    """(per-block-buffer byte target, scoped-VMEM limit), generation aware."""
    cap = None
    try:
        cap = getattr(pltpu.get_tpu_info(), "vmem_capacity_bytes", None)
    except Exception:
        cap = None
    if cap is None or cap <= 64 * _MIB:
        # v7x-class (64 MiB/TC) or unknown: 2*in + 2*out buffers -> ~40 MiB total.
        return 10 * _MIB, 48 * _MIB
    # v5e / v6e (128 MiB physical): raise the scoped limit explicitly.
    return 12 * _MIB, 64 * _MIB


def _largest_lane_width(total_elems, cap=4096):
    """Largest multiple of 128 (<= cap) dividing total_elems, or 0 if none."""
    w = min(cap, total_elems)
    w -= w % 128
    while w >= 128:
        if total_elems % w == 0:
            return w
        w -= 128
    return 0


def _round_down_to(v, m):
    return max((v // m) * m, m)


def _pick_row_block(rows, width, itemsize, block_budget_bytes):
    """Rows per block: byte-sized, sublane-rounded, divisor-preferring,
    and keeping >= 2 grid steps when there is enough work (megacore)."""
    # Sublane packing multiple: f32 -> 8, bf16 -> 16, int8/fp8 -> 32; clamp so
    # 8-byte dtypes never hit a zero multiple.
    sub = 8 * max(1, 4 // max(1, itemsize))
    if rows <= sub:
        return rows  # tiny input: full-extent block (no divisibility constraint)

    row_bytes = width * itemsize
    rb = max(block_budget_bytes // row_bytes, 1)
    # Keep at least 2 grid steps (ideally >= 8) so both v7x TCs get work and
    # input-prefetch overlaps output-writeback.
    target_steps = 8 if rows >= 8 * sub else 2
    rb = min(rb, pl.cdiv(rows, target_steps), rows)
    rb = _round_down_to(rb, sub)
    if rb >= rows:  # safety net: force >= 2 steps
        rb = _round_down_to(max(rows // 2, sub), sub)

    # Prefer a nearby block size that divides rows (avoids a masked tail
    # store), but never shrink the block by more than ~25%.
    lo = max(rb - 8 * sub, (rb * 3) // 4, sub)
    for cand in range(rb, lo - 1, -sub):
        if rows % cand == 0:
            return cand
    return rb


def _copy_slab(x2, donate):
    """Streamed HBM copy of a 2-D slab via pallas_call."""
    rows, width = x2.shape
    itemsize = jnp.dtype(x2.dtype).itemsize
    block_budget, vmem_limit = _vmem_budget_bytes()
    row_block = _pick_row_block(rows, width, itemsize, block_budget)
    grid = (pl.cdiv(rows, row_block),)
    nbytes = rows * width * itemsize

    extra = {}
    if donate:
        # Only useful if the caller actually donates x (saves the output
        # allocation's footprint; bandwidth is unchanged).
        extra["input_output_aliases"] = {0: 0}

    return pl.pallas_call(
        _copy_kernel,
        out_shape=jax.ShapeDtypeStruct((rows, width), x2.dtype),
        grid_spec=pltpu.PrefetchScalarGridSpec(
            num_scalar_prefetch=0,
            grid=grid,
            in_specs=[pl.BlockSpec((row_block, width), lambda i: (i, 0))],
            out_specs=pl.BlockSpec((row_block, width), lambda i: (i, 0)),
        ),
        compiler_params=pltpu.CompilerParams(
            # Row-chunk axis is independent -> shardable across both v7x TCs.
            dimension_semantics=("parallel",),
            vmem_limit_bytes=vmem_limit,
        ),
        cost_estimate=pl.CostEstimate(
            flops=0, transcendentals=0, bytes_accessed=2 * nbytes
        ),
        **extra,
    )(x2)


def time_distributed_flatten(x, *, force_kernel=False, donate=False):
    """x: (B, T, *spatial) -> (B, T, prod(spatial)), dtype preserved.

    Default path elides the kernel (flatten is a free metadata reshape for a
    contiguous array).  `force_kernel=True` routes through the Pallas copy.
    """
    B, T = x.shape[0], x.shape[1]
    D = math.prod(x.shape[2:])

    if not force_kernel:
        # Primary path: zero HBM traffic.
        return x.reshape(B, T, D)

    total = B * T * D
    width = _largest_lane_width(total)
    if width:
        # Lane-dense slab: tiling decoupled from D, always unmasked vst.
        x2 = x.reshape(total // width, width)
    else:
        # No lane-dense slab width exists (total not a multiple of 128);
        # fall back to (B*T, D) with a full-extent (possibly masked) last dim.
        x2 = x.reshape(B * T, D)
    y2 = _copy_slab(x2, donate)
    return y2.reshape(B, T, D)


if __name__ == "__main__":
    key = jax.random.PRNGKey(0)
    k1, k2, k3, k4 = jax.random.split(key, 4)

    # 1) f32, lane-dense slab path (total elements multiple of 128).
    B, T, C, H, W = 2, 4, 3, 8, 16  # D = 384
    x = jax.random.normal(k1, (B, T, C, H, W), dtype=jnp.float32)
    y = jax.block_until_ready(time_distributed_flatten(x, force_kernel=True))
    assert y.shape == (B, T, C * H * W) and y.dtype == x.dtype
    assert jnp.array_equal(y, x.reshape(B, T, C * H * W)), "mismatch (f32)"

    # 2) bf16, different spatial extents.
    B2, T2, C2, H2, W2 = 2, 3, 2, 4, 32  # D = 256
    x2 = jax.random.normal(k2, (B2, T2, C2, H2, W2), dtype=jnp.bfloat16)
    y2 = jax.block_until_ready(time_distributed_flatten(x2, force_kernel=True))
    assert y2.dtype == jnp.bfloat16
    assert jnp.array_equal(y2, x2.reshape(B2, T2, C2 * H2 * W2)), "mismatch (bf16)"

    # 3) Medium shape: multi-step parallel grid (megacore / pipelining path).
    B3, T3, C3, H3, W3 = 4, 8, 8, 16, 32  # D = 4096
    x3 = jax.random.normal(k3, (B3, T3, C3, H3, W3), dtype=jnp.float32)
    y3 = jax.block_until_ready(time_distributed_flatten(x3, force_kernel=True))
    assert jnp.array_equal(y3, x3.reshape(B3, T3, C3 * H3 * W3)), "mismatch (multi-step)"

    # 4) Odd D (not a multiple of 128): exercises the (B*T, D) fallback path.
    B4, T4, C4, H4, W4 = 2, 4, 3, 7, 7  # D = 147
    x4 = jax.random.normal(k4, (B4, T4, C4, H4, W4), dtype=jnp.float32)
    y4 = jax.block_until_ready(time_distributed_flatten(x4, force_kernel=True))
    assert jnp.array_equal(y4, x4.reshape(B4, T4, C4 * H4 * W4)), "mismatch (fallback)"

    # 5) Default path: kernel elided, pure metadata reshape.
    y5 = jax.block_until_ready(time_distributed_flatten(x))
    assert jnp.array_equal(y5, x.reshape(B, T, C * H * W)), "mismatch (elided)"

    print("KERNEL_OK")
</pallas_src>

<mosaic_0001>
module attributes {stable_mosaic.version = 11 : i64} {
  func.func @_copy_kernel(%arg0: i32, %arg1: memref<1x3072xf32, #tpu.memory_space<vmem>>, %arg2: memref<1x3072xf32, #tpu.memory_space<vmem>>) attributes {dimension_semantics = [#tpu.dimension_semantics<parallel>], iteration_bounds = array<i64: 1>, scalar_prefetch = 0 : i64, scratch_operands = 0 : i64, tpu.core_type = #tpu.core_type<tc>, window_params = [{transform_indices = @transform_0, window_bounds = array<i64: 1, 3072>}, {transform_indices = @transform_1, window_bounds = array<i64: 1, 3072>}]} {
    %c0 = arith.constant 0 : index
    %c0_0 = arith.constant 0 : index
    %0 = vector.load %arg1[%c0, %c0_0] : memref<1x3072xf32, #tpu.memory_space<vmem>>, vector<1x3072xf32>
    %c0_1 = arith.constant 0 : index
    %c0_2 = arith.constant 0 : index
    %1 = vector.load %arg2[%c0_1, %c0_2] : memref<1x3072xf32, #tpu.memory_space<vmem>>, vector<1x3072xf32>
    tpu.vector_store %arg2[%c0_1, %c0_2], %0 {strides = array<i32>} : memref<1x3072xf32, #tpu.memory_space<vmem>>, vector<1x3072xf32>,
    return
  }
  func.func @transform_0(%arg0: i32) -> (i32, i32) {
    %c0_i32 = arith.constant 0 : i32
    %c0_i32_0 = arith.constant 0 : i32
    return %arg0, %c0_i32 : i32, i32
  }
  func.func @transform_1(%arg0: i32) -> (i32, i32) {
    %c0_i32 = arith.constant 0 : i32
    %c0_i32_0 = arith.constant 0 : i32
    return %arg0, %c0_i32 : i32, i32
  }
}

</mosaic_0001>

<bundles_post_ra>
// kernel: tpu_custom_call.1
= control target key start
LH: loop header
LB: loop body
LE: loop exit
PB: predicated region body
PF: predicated region fallthrough
CT: control target
= control target key end

     0   :  { %6 = vsyncpa [#allocation3], 0  ;;  %s128_s0 = inlined_call_operand.hbm [shape: f32[1,3072], index: 0, kind: input, shape index: {}]   ;;  %s129_s1 = inlined_call_operand.hbm [shape: f32[1,3072], index: 1, kind: output, shape index: {}]  }
   0x1   :  { %7 = vsyncpa [#allocation4], 0  ;;  %s92_s6 = smov [#allocation2]   ;;  %s44_s10 = scalar_lea.hbm %s128_s0, 384 }
   0x2   :  { %s14_s7 = sshll.u32 %s92_s6, 4  ;;  %p45_p0 = scmp.ne.s32.totalorder %s128_s0, %s44_s10  ;;  %s15_s7 = int_to_ptr.vmem [resolvable:$true] %s14_s7 }
   0x3   :  { %p48_p1 = scmp.lt.u32.totalorder %s44_s10, %s128_s0 }
   0x5   :  { %p50_p2 = pnand %p48_p1, %p45_p0 }
   0x7   :  { %53 = shalt.err (!%p50_p2)
}
   0x8   :  { %s54_s15 = scalar_lea.vmem %s15_s7, 384  ;;  %p59_p4 = scmp.lt.s32.totalorder %s15_s7, %s15_s7 }
   0x9   :  { %p55_p3 = scmp.ne.s32.totalorder %s15_s7, %s54_s15  ;;  %p60_p5 = scmp.lt.s32.totalorder %s54_s15, %s54_s15 }
   0xb   :  { %p61_p6 = por %p60_p5, %p59_p4 }
   0xd   :  { %p62_p7 = pnand %p61_p6, %p55_p3 }
   0xf   :  { %65 = shalt.err (!%p62_p7)
}
  0x10   :  { %17 = dma.hbm_to_vmem [thread:$0]  %s128_s0, 384, %s15_s7, [#allocation3]  }
  0x11   :  { %88 = dma.done.wait [#allocation3], 384  }
  0x12   :  { %89 = vsyncadd [#allocation3], 4294966912  ;;  %s93_s18 = smov [#allocation5]   ;;  %v21_v0 = vld [vmem:[#allocation2] sm:$0xff]  ;;  %v22_v1 = vld [vmem:[#allocation2 + $0x8] sm:$0xff] }
  0x13   :  { %s33_s19 = sshll.u32 %s93_s18, 4  ;;  %v23_v2 = vld [vmem:[#allocation2 + $0x10] sm:$0xff]  ;;  %24 = vst [vmem:[#allocation5] sm:$0xff] %v21_v0  ;;  %25 = vst [vmem:[#allocation5 + $0x8] sm:$0xff] %v22_v1  ;;  %s34_s19 = int_to_ptr.vmem [resolvable:$true] %s33_s19 }
  0x14   :  { %26 = vst [vmem:[#allocation5 + $0x10] sm:$0xff] %v23_v2  ;;  %s66_s20 = scalar_lea.vmem %s34_s19, 384  ;;  %p71_p9 = scmp.lt.s32.totalorder %s34_s19, %s34_s19 }
  0x15   :  { %p67_p8 = scmp.ne.s32.totalorder %s34_s19, %s66_s20  ;;  %p72_p10 = scmp.lt.s32.totalorder %s66_s20, %s66_s20 }
  0x17   :  { %p73_p11 = por %p72_p10, %p71_p9 }
  0x19   :  { %p74_p12 = pnand %p73_p11, %p67_p8 }
  0x1b   :  { %77 = shalt.err (!%p74_p12)
}
  0x1c   :  { %s78_s22 = scalar_lea.hbm %s129_s1, 384 }
  0x1d   :  { %p79_p13 = scmp.ne.s32.totalorder %s129_s1, %s78_s22  ;;  %p82_p0 = scmp.lt.u32.totalorder %s78_s22, %s129_s1 }
  0x1f   :  { %p84_p1 = pnand %p82_p0, %p79_p13 }
  0x21   :  { %87 = shalt.err (!%p84_p1)
}
  0x22   :  { %36 = dma.vmem_to_hbm [thread:$0]  %s34_s19, 384, %s129_s1, [#allocation4]  }
  0x23   :  { %90 = dma.done.wait [#allocation4], 384  }
  0x24   :  { %91 = vsyncadd [#allocation4], 4294966912 }
  0x25   :  { %40 = vsyncpa [#allocation3], 1 }
  0x26   :  { %41 = vsyncpa [#allocation4], 1 }

</bundles_post_ra>
